<compile_context>
chip_gen: v7x
topology: tpu7x:2x2x1
jax: 0.10.0
libtpu: 0.0.40
codegen_flags: <defaults>
</compile_context>

<pallas_src>
import functools

import jax
import jax.numpy as jnp
from jax.experimental import pallas as pl
from jax.experimental.pallas import tpu as pltpu  # noqa: F401  (TPU backend)


# --------------------------------------------------------------------------
# Fused Pallas kernel: 2-layer RGCN + per-edge dot-product scores
# --------------------------------------------------------------------------
def _fused_model_kernel(a_cat_ref, x_ref, w1_ref, b1_ref, w2_ref, b2_ref,
                        s_src_ref, s_dst_ref, score_ref, *, num_rel):
    a_cat = a_cat_ref[...]                              # (N, R*N)
    x = x_ref[...]                                      # (N, Fin)

    # ---- layer 1: h1 = relu( sum_r A_r @ X @ W1_r + sum_r b1_r ) ----------
    # Stack X @ W1_r along the contraction dim so the relation sum collapses
    # into a single (N, R*N) @ (R*N, Fhid) matmul.
    xw1 = jnp.concatenate(
        [jnp.dot(x, w1_ref[r], preferred_element_type=jnp.float32)
         for r in range(num_rel)],
        axis=0)                                         # (R*N, Fhid)
    h1 = jnp.dot(a_cat, xw1, preferred_element_type=jnp.float32) + b1_ref[...]
    h1 = jnp.maximum(h1, 0.0)

    # ---- layer 2: h2 = sum_r A_r @ h1 @ W2_r + sum_r b2_r ------------------
    xw2 = jnp.concatenate(
        [jnp.dot(h1, w2_ref[r], preferred_element_type=jnp.float32)
         for r in range(num_rel)],
        axis=0)                                         # (R*N, Fout)
    h2 = jnp.dot(a_cat, xw2, preferred_element_type=jnp.float32) + b2_ref[...]

    # ---- edge scores (u_dot_v), pos+neg in one pass ------------------------
    # One-hot gather matrices keep the gather on the MXU; h2 never leaves VMEM.
    hs = jnp.dot(s_src_ref[...], h2, preferred_element_type=jnp.float32)  # (E,F)
    hd = jnp.dot(s_dst_ref[...], h2, preferred_element_type=jnp.float32)  # (E,F)
    score_ref[...] = jnp.sum(hs * hd, axis=-1)[None, :]                   # (1,E)


def fused_model_call(a_cat, x, w1, b1_sum, w2, b2_sum, s_src, s_dst):
    num_rel = w1.shape[0]
    e_total = s_src.shape[0]
    kernel = functools.partial(_fused_model_kernel, num_rel=num_rel)
    return pl.pallas_call(
        kernel,
        out_shape=jax.ShapeDtypeStruct((1, e_total), jnp.float32),
    )(a_cat, x, w1, b1_sum, w2, b2_sum, s_src, s_dst)


# --------------------------------------------------------------------------
# Glue: graph construction / normalization (plain JAX, not the hot path)
# --------------------------------------------------------------------------
def build_adjacency(src, dst, num_nodes):
    m = jnp.zeros((num_nodes, num_nodes), jnp.float32)
    return m.at[dst, src].add(1.0)  # M[dst, src] += 1 (multigraph-compatible)


def normalize_adjacency(m):
    # DGL GraphConv(norm='both') with degrees clamped to >= 1.
    out_deg = jnp.clip(jnp.sum(m, axis=0), 1.0, None)  # per src node
    in_deg = jnp.clip(jnp.sum(m, axis=1), 1.0, None)   # per dst node
    return m * (in_deg[:, None] ** -0.5) * (out_deg[None, :] ** -0.5)


def model_forward(params, a_norm, pos_edges, neg_edges, x):
    """Model.forward(g, neg_g, x, etype):
       h = RGCN(g, x); return (u_dot_v on g[etype], u_dot_v on neg_g[etype])."""
    R, N, _ = a_norm.shape

    # (R, N_dst, N_src) -> (N_dst, R*N_src): relation sum folded into K dim.
    a_cat = jnp.transpose(a_norm, (1, 0, 2)).reshape(N, R * N)
    # Bias sum over relations (HeteroGraphConv aggregate='sum' adds every b_r).
    b1_sum = jnp.sum(params["b1"], axis=0)              # (1, Fhid)
    b2_sum = jnp.sum(params["b2"], axis=0)              # (1, Fout)

    ps, pd = pos_edges
    ns, nd = neg_edges
    e_pos = ps.shape[0]
    e_neg = ns.shape[0]
    src_all = jnp.concatenate([ps, ns], axis=0)
    dst_all = jnp.concatenate([pd, nd], axis=0)
    s_src = jax.nn.one_hot(src_all, N, dtype=jnp.float32)   # (E_tot, N)
    s_dst = jax.nn.one_hot(dst_all, N, dtype=jnp.float32)   # (E_tot, N)

    scores = fused_model_call(a_cat, x, params["w1"], b1_sum,
                              params["w2"], b2_sum, s_src, s_dst)  # (1, E_tot)

    pos_score = scores[0, :e_pos].reshape(e_pos, 1)
    neg_score = scores[0, e_pos:].reshape(e_neg, 1)
    return pos_score, neg_score


# --------------------------------------------------------------------------
# Plain-JAX reference (mirrors DGL semantics) for a correctness check
# --------------------------------------------------------------------------
def reference_forward(params, a_norm, pos_edges, neg_edges, x):
    def layer(a, xin, w, b):
        out = jnp.zeros((a.shape[1], w.shape[2]), jnp.float32)
        for r in range(a.shape[0]):
            out = out + a[r] @ xin @ w[r] + b[r]
        return out

    h = jax.nn.relu(layer(a_norm, x, params["w1"], params["b1"]))
    h = layer(a_norm, h, params["w2"], params["b2"])
    ps, pd = pos_edges
    ns, nd = neg_edges
    pos = jnp.sum(h[ps] * h[pd], axis=-1, keepdims=True)
    neg = jnp.sum(h[ns] * h[nd], axis=-1, keepdims=True)
    return pos, neg


# --------------------------------------------------------------------------
# Main
# --------------------------------------------------------------------------
if __name__ == "__main__":
    N = 16            # number of nodes (single node type)
    IN_F = 8          # in_features
    HID_F = 16        # hidden_features
    OUT_F = 8         # out_features
    R = 2             # number of relation types (rel_names)
    ETYPE = 0         # etype used by the predictor
    E = N             # edges per relation
    E_NEG = N         # edges in the negative graph for ETYPE

    key = jax.random.PRNGKey(0)
    k_x, k_w1, k_w2 = jax.random.split(key, 3)

    # Deterministic parameters (shapes follow GraphConv per relation).
    params = {
        "w1": jax.random.normal(k_w1, (R, IN_F, HID_F), jnp.float32) * 0.1,
        "b1": jnp.zeros((R, 1, HID_F), jnp.float32),
        "w2": jax.random.normal(k_w2, (R, HID_F, OUT_F), jnp.float32) * 0.1,
        "b2": jnp.zeros((R, 1, OUT_F), jnp.float32),
    }

    # Node features for the single node type.
    x = jax.random.normal(k_x, (N, IN_F), jnp.float32)

    # Deterministic edge lists for each relation of the positive graph g.
    idx = jnp.arange(N, dtype=jnp.int32)
    g_edges = []
    for r in range(R):
        src = idx
        dst = (idx * (r + 2) + 1) % N
        g_edges.append((src, dst))

    # Negative graph edges for ETYPE.
    neg_src = idx
    neg_dst = (idx * 5 + 3) % N

    # Stack normalized adjacencies: (R, N_dst, N_src).
    a_norm = jnp.stack(
        [normalize_adjacency(build_adjacency(s, d, N)) for (s, d) in g_edges],
        axis=0,
    )

    pos_edges_etype = g_edges[ETYPE]
    neg_edges_etype = (neg_src, neg_dst)

    fwd = jax.jit(model_forward)
    pos_score, neg_score = fwd(params, a_norm, pos_edges_etype,
                               neg_edges_etype, x)
    jax.block_until_ready((pos_score, neg_score))

    assert pos_score.shape == (E, 1) and neg_score.shape == (E_NEG, 1)

    pos_ref, neg_ref = reference_forward(params, a_norm, pos_edges_etype,
                                         neg_edges_etype, x)
    assert jnp.allclose(pos_score, pos_ref, atol=2e-2, rtol=2e-2)
    assert jnp.allclose(neg_score, neg_ref, atol=2e-2, rtol=2e-2)

    print("KERNEL_OK")
</pallas_src>

<mosaic_0001>
module attributes {stable_mosaic.version = 11 : i64} {
  func.func @_fused_model_kernel(%arg0: memref<16x32xf32, #tpu.memory_space<vmem>>, %arg1: memref<16x8xf32, #tpu.memory_space<vmem>>, %arg2: memref<2x8x16xf32, #tpu.memory_space<vmem>>, %arg3: memref<1x16xf32, #tpu.memory_space<vmem>>, %arg4: memref<2x16x8xf32, #tpu.memory_space<vmem>>, %arg5: memref<1x8xf32, #tpu.memory_space<vmem>>, %arg6: memref<32x16xf32, #tpu.memory_space<vmem>>, %arg7: memref<32x16xf32, #tpu.memory_space<vmem>>, %arg8: memref<1x32xf32, #tpu.memory_space<vmem>>) attributes {dimension_semantics = [], scalar_prefetch = 0 : i64, scratch_operands = 0 : i64, tpu.core_type = #tpu.core_type<tc>} {
    %c0 = arith.constant 0 : index
    %c0_0 = arith.constant 0 : index
    %0 = vector.load %arg0[%c0, %c0_0] : memref<16x32xf32, #tpu.memory_space<vmem>>, vector<16x32xf32>
    %c0_1 = arith.constant 0 : index
    %c0_2 = arith.constant 0 : index
    %1 = vector.load %arg1[%c0_1, %c0_2] : memref<16x8xf32, #tpu.memory_space<vmem>>, vector<16x8xf32>
    %c0_3 = arith.constant 0 : index
    %c0_4 = arith.constant 0 : index
    %c0_5 = arith.constant 0 : index
    %2 = vector.load %arg2[%c0_3, %c0_4, %c0_5] : memref<2x8x16xf32, #tpu.memory_space<vmem>>, vector<1x8x16xf32>
    %3 = vector.shape_cast %2 : vector<1x8x16xf32> to vector<8x16xf32>
    %cst = arith.constant dense<0.000000e+00> : vector<16x16xf32>
    %4 = tpu.matmul %1, %3, %cst {dimension_numbers = #tpu.dot_dimension_numbers<[1], [0], [0], [1], [0, 0, 1, 1], [], []>} : vector<16x8xf32>, vector<8x16xf32>, vector<16x16xf32> -> vector<16x16xf32>
    %c1 = arith.constant 1 : index
    %c0_6 = arith.constant 0 : index
    %c0_7 = arith.constant 0 : index
    %5 = vector.load %arg2[%c1, %c0_6, %c0_7] : memref<2x8x16xf32, #tpu.memory_space<vmem>>, vector<1x8x16xf32>
    %6 = vector.shape_cast %5 : vector<1x8x16xf32> to vector<8x16xf32>
    %cst_8 = arith.constant dense<0.000000e+00> : vector<16x16xf32>
    %7 = tpu.matmul %1, %6, %cst_8 {dimension_numbers = #tpu.dot_dimension_numbers<[1], [0], [0], [1], [0, 0, 1, 1], [], []>} : vector<16x8xf32>, vector<8x16xf32>, vector<16x16xf32> -> vector<16x16xf32>
    %8 = tpu.concatenate %4, %7 in 0 : vector<16x16xf32>, vector<16x16xf32> -> vector<32x16xf32>
    %cst_9 = arith.constant dense<0.000000e+00> : vector<16x16xf32>
    %9 = tpu.matmul %0, %8, %cst_9 {dimension_numbers = #tpu.dot_dimension_numbers<[1], [0], [0], [1], [0, 0, 1, 1], [], []>} : vector<16x32xf32>, vector<32x16xf32>, vector<16x16xf32> -> vector<16x16xf32>
    %c0_10 = arith.constant 0 : index
    %c0_11 = arith.constant 0 : index
    %10 = vector.load %arg3[%c0_10, %c0_11] : memref<1x16xf32, #tpu.memory_space<vmem>>, vector<1x16xf32>
    %11 = vector.broadcast %10 : vector<1x16xf32> to vector<16x16xf32>
    %12 = arith.addf %9, %11 : vector<16x16xf32>
    %cst_12 = arith.constant 0.000000e+00 : f32
    %13 = vector.broadcast %cst_12 : f32 to vector<16x16xf32>
    %14 = arith.maximumf %12, %13 : vector<16x16xf32>
    %c0_13 = arith.constant 0 : index
    %c0_14 = arith.constant 0 : index
    %c0_15 = arith.constant 0 : index
    %15 = vector.load %arg4[%c0_13, %c0_14, %c0_15] : memref<2x16x8xf32, #tpu.memory_space<vmem>>, vector<1x16x8xf32>
    %16 = vector.shape_cast %15 : vector<1x16x8xf32> to vector<16x8xf32>
    %cst_16 = arith.constant dense<0.000000e+00> : vector<16x8xf32>
    %17 = tpu.matmul %14, %16, %cst_16 {dimension_numbers = #tpu.dot_dimension_numbers<[1], [0], [0], [1], [0, 0, 1, 1], [], []>} : vector<16x16xf32>, vector<16x8xf32>, vector<16x8xf32> -> vector<16x8xf32>
    %c1_17 = arith.constant 1 : index
    %c0_18 = arith.constant 0 : index
    %c0_19 = arith.constant 0 : index
    %18 = vector.load %arg4[%c1_17, %c0_18, %c0_19] : memref<2x16x8xf32, #tpu.memory_space<vmem>>, vector<1x16x8xf32>
    %19 = vector.shape_cast %18 : vector<1x16x8xf32> to vector<16x8xf32>
    %cst_20 = arith.constant dense<0.000000e+00> : vector<16x8xf32>
    %20 = tpu.matmul %14, %19, %cst_20 {dimension_numbers = #tpu.dot_dimension_numbers<[1], [0], [0], [1], [0, 0, 1, 1], [], []>} : vector<16x16xf32>, vector<16x8xf32>, vector<16x8xf32> -> vector<16x8xf32>
    %21 = tpu.concatenate %17, %20 in 0 : vector<16x8xf32>, vector<16x8xf32> -> vector<32x8xf32>
    %cst_21 = arith.constant dense<0.000000e+00> : vector<16x8xf32>
    %22 = tpu.matmul %0, %21, %cst_21 {dimension_numbers = #tpu.dot_dimension_numbers<[1], [0], [0], [1], [0, 0, 1, 1], [], []>} : vector<16x32xf32>, vector<32x8xf32>, vector<16x8xf32> -> vector<16x8xf32>
    %c0_22 = arith.constant 0 : index
    %c0_23 = arith.constant 0 : index
    %23 = vector.load %arg5[%c0_22, %c0_23] : memref<1x8xf32, #tpu.memory_space<vmem>>, vector<1x8xf32>
    %24 = vector.broadcast %23 : vector<1x8xf32> to vector<16x8xf32>
    %25 = arith.addf %22, %24 : vector<16x8xf32>
    %c0_24 = arith.constant 0 : index
    %c0_25 = arith.constant 0 : index
    %26 = vector.load %arg6[%c0_24, %c0_25] : memref<32x16xf32, #tpu.memory_space<vmem>>, vector<32x16xf32>
    %cst_26 = arith.constant dense<0.000000e+00> : vector<32x8xf32>
    %27 = tpu.matmul %26, %25, %cst_26 {dimension_numbers = #tpu.dot_dimension_numbers<[1], [0], [0], [1], [0, 0, 1, 1], [], []>} : vector<32x16xf32>, vector<16x8xf32>, vector<32x8xf32> -> vector<32x8xf32>
    %c0_27 = arith.constant 0 : index
    %c0_28 = arith.constant 0 : index
    %28 = vector.load %arg7[%c0_27, %c0_28] : memref<32x16xf32, #tpu.memory_space<vmem>>, vector<32x16xf32>
    %cst_29 = arith.constant dense<0.000000e+00> : vector<32x8xf32>
    %29 = tpu.matmul %28, %25, %cst_29 {dimension_numbers = #tpu.dot_dimension_numbers<[1], [0], [0], [1], [0, 0, 1, 1], [], []>} : vector<32x16xf32>, vector<16x8xf32>, vector<32x8xf32> -> vector<32x8xf32>
    %30 = arith.mulf %27, %29 : vector<32x8xf32>
    %cst_30 = arith.constant dense<0.000000e+00> : vector<32xf32>
    %31 = vector.multi_reduction <add>, %30, %cst_30 [1] : vector<32x8xf32> to vector<32xf32>
    %32 = vector.shape_cast %31 : vector<32xf32> to vector<1x32xf32>
    %c0_31 = arith.constant 0 : index
    %c0_32 = arith.constant 0 : index
    %33 = vector.load %arg8[%c0_31, %c0_32] : memref<1x32xf32, #tpu.memory_space<vmem>>, vector<1x32xf32>
    tpu.vector_store %arg8[%c0_31, %c0_32], %32 {strides = array<i32>} : memref<1x32xf32, #tpu.memory_space<vmem>>, vector<1x32xf32>,
    return
  }
}

</mosaic_0001>

<bundles_post_ra>
// kernel: model_forward.1
= control target key start
LH: loop header
LB: loop body
LE: loop exit
PB: predicated region body
PF: predicated region fallthrough
CT: control target
= control target key end

     0   :  { %vm34_vm0 = vcmask 64512   ;;  %vm200_vm1 = vcmask 261120   ;;  %vm286_vm2 = vcmask 130048   ;;  %v750_v61 = vlaneseq  ;;  %s1079_s2 = inlined_call_operand.vmem [shape: f32[2,8,16], index: 2, kind: input, shape index: {}]   ;;  %s1080_s1 = inlined_call_operand.vmem [shape: f32[16,8], index: 1, kind: input, shape index: {}]   ;;  %s1081_s0 = inlined_call_operand.vmem [shape: f32[16,32], index: 0, kind: input, shape index: {}]   ;;  %s1082_s4 = inlined_call_operand.vmem [shape: f32[2,16,8], index: 4, kind: input, shape index: {}]   ;;  %s1083_s3 = inlined_call_operand.vmem [shape: f32[1,16], index: 3, kind: input, shape index: {}]   ;;  %s1084_s6 = inlined_call_operand.vmem [shape: f32[32,16], index: 6, kind: input, shape index: {}]   ;;  %s1085_s7 = inlined_call_operand.vmem [shape: f32[32,16], index: 7, kind: input, shape index: {}]   ;;  %s1086_s5 = inlined_call_operand.vmem [shape: f32[1,8], index: 5, kind: input, shape index: {}]   ;;  %s1087_s8 = inlined_call_operand.vmem [shape: f32[1,32], index: 8, kind: output, shape index: {}]  }
   0x1   :  { %v33_v0 = vld [vmem:[%s1079_s2] sm:$0xff]  ;;  %v32_v2 = vld [vmem:[%s1080_s1 + $0x8] sm:$0xff]  ;;  %v794_v15 = vld [vmem:[%s1082_s4 + $0x10] sm:$0xff]  ;;  %vm761_vm3 = vcmask 130112   ;;  %vm768_vm4 = vcmask 195712   ;;  %vm775_vm5 = vcmask 261312  }
   0x2   :  { %v31_v1 = vld [vmem:[%s1080_s1] sm:$0xff]  ;;  %847 = vmatprep.subr.mxu0 %v33_v0  ;;  %v786_v3 = vld [vmem:[%s1079_s2 + $0x8] sm:$0xff]  ;;  %v795_v16 = vld [vmem:[%s1082_s4 + $0x18] sm:$0xff]  ;;  %v751_v62 = vand.u32 127, %v750_v61  ;;  %vm778_vm6 = vcmask 253952  }
   0x3   :  { %849 = vmatprep.mubr.msk.f32.mxu0 %vm34_vm0, %v31_v1  ;;  %848 = vmatpush3.msra.mxu0 %v33_v0  ;;  %v29_v4 = vld [vmem:[%s1081_s0] sm:$0xff]  ;;  %v30_v11 = vld [vmem:[%s1081_s0 + $0x8] sm:$0xff]  ;;  %v925_v17 = vpack.c.bf16 %v795_v16, %v794_v15  ;;  %v530_v41 = vld [vmem:[%s1084_s6 + $0x10] sm:$0xff] }
   0x4   :  { %852 = vmatprep.subr.mxu1 %v786_v3  ;;  %850 = vmatmul.mubr.msk.f32.vlgmr.msra.gmra.mrb[0].mxu0 %vm34_vm0, %v32_v2  ;;  %v284_v12 = vld [vmem:[%s1082_s4] sm:$0xff]  ;;  %v285_v13 = vld [vmem:[%s1082_s4 + $0x8] sm:$0xff]  ;;  %v531_v42 = vld [vmem:[%s1084_s6 + $0x18] sm:$0xff]  ;;  %v756_v0 = vadd.s32 4294967288, %v751_v62 }
   0x5   :  { %853 = vmatpush3.msra.mxu1 %v786_v3  ;;  %854 = vmatprep.mubr.msk.f32.mxu1 %vm34_vm0, %v31_v1  ;;  %v921_v14 = vpack.c.bf16 %v285_v13, %v284_v12  ;;  %v789_v18 = vld [vmem:[%s1083_s3] ss:$0 sm:$0xff]  ;;  %v529_v39 = vld [vmem:[%s1084_s6 + $0x8] sm:$0xff]  ;;  %v631_v43 = vld [vmem:[%s1085_s7 + $0x10] sm:$0xff]  ;;  %v763_v1 = vadd.s32 4294967280, %v751_v62 }
   0x6   :  { %855 = vmatmul.mubr.msk.f32.vlgmr.msra.gmra.mrb[0].mxu1 %vm34_vm0, %v32_v2  ;;  %865 = vmatprep.mubr.msk.f32.mxu0 %vm200_vm1, %v29_v4  ;;  %v528_v31 = vld [vmem:[%s1084_s6] sm:$0xff]  ;;  %v630_v40 = vld [vmem:[%s1085_s7 + $0x8] sm:$0xff]  ;;  %v632_v44 = vld [vmem:[%s1085_s7 + $0x18] sm:$0xff]  ;;  %v753_v2 = vshrl.u32 %v750_v61, 7 }
   0x7   :  { %922 = vmatprep.subr.bf16.mxu1 %v921_v14  ;;  %v629_v32 = vld [vmem:[%s1085_s7] sm:$0xff] }
   0x8   :  { %924 = vmatpush3.bf16.msra.mxu1 %v921_v14  ;;  %v798_v33 = vld [vmem:[%s1086_s5] ss:$0 sm:$0xff]  ;;  %v759_v3 = vsub.s32 %v756_v0, %v753_v2 }
   0x9   :  { %926 = vmatprep.subr.bf16.mxu1 %v925_v17 }
  0xd7   :  { %v851_v5 = vpop.f32.mrb[0].mxu0 }
  0xd8   :  { %v107_v6 = vpop.f32.mrb[1].mxu0 }
  0xd9   :  { %v913_v7 = vpack.c.bf16 %v851_v5, %v107_v6  ;;  %v856_v8 = vpop.f32.mrb[0].mxu1  ;;  %v766_v6 = vsub.s32 %v763_v1, %v753_v2 }
  0xda   :  { %v184_v9 = vpop.f32.mrb[1].mxu1 }
  0xdb   :  { %v917_v10 = vpack.c.bf16 %v856_v8, %v184_v9  ;;  %914 = vmatprep.subr.bf16.mxu0 %v913_v7 }
  0xdc   :  { %916 = vmatpush3.bf16.msra.mxu0 %v913_v7  ;;  %v754_v7 = vsub.s32 %v751_v62, %v753_v2 }
  0xdd   :  { %918 = vmatprep.subr.bf16.mxu0 %v917_v10 }
  0xe0   :  { %920 = vmatpush3.bf16.msra.mxu0 %v917_v10 }
  0xe3   :  { %866 = vmatmul.mubr.msk.f32.vlgmr.msra.gmra.mrb[2].mxu0 %vm200_vm1, %v30_v11 }
  0xe4   :  { %890 = vmatprep.mubr.msk.f32.mxu0 %vm200_vm1, %v29_v4  ;;  %v770_v4 = vadd.s32 4294967272, %v751_v62 }
  0xe6   :  { %v773_v10 = vsub.s32 %v770_v4, %v753_v2 }
 0x1b6   :  { %v867_v19 = vpop.f32.mrb[2].mxu0 }
 0x1b7   :  { %v279_v20 = vadd.f32 %v867_v19, %v789_v18  ;;  %v273_v21 = vpop.f32.mrb[3].mxu0 }
 0x1b8   :  { %v274_v22 = vadd.f32 %v789_v18, %v273_v21 }
 0x1b9   :  { %v283_v24 = vmax.f32 %v279_v20, 0.0 }
 0x1ba   :  { %v282_v23 = vmax.f32 %v274_v22, 0.0 }
 0x1bc   :  { %872 = vmatprep.mubr.msk.f32.mxu1 %vm286_vm2, %v282_v23 }
 0x1bd   :  { %873 = vmatmul.mubr.msk.f32.vlgmr.msra.gmra.mrb[2].mxu1 %vm286_vm2, %v283_v24 }
 0x1be   :  { %928 = vmatpush3.bf16.msra.mxu1 %v925_v17  ;;  %879 = vmatprep.mubr.msk.f32.mxu1 %vm286_vm2, %v282_v23 }
 0x1c1   :  { %880 = vmatmul.mubr.msk.f32.vlgmr.msra.gmra.mrb[4].mxu1 %vm286_vm2, %v283_v24 }
 0x1c2   :  { %897 = vmatprep.mubr.msk.f32.mxu1 %vm286_vm2, %v528_v31 }
 0x290   :  { %v874_v25 = vpop.f32.mrb[2].mxu1 }
 0x291   :  { %v359_v26 = vpop.f32.mrb[3].mxu1 }
 0x292   :  { %v929_v27 = vpack.c.bf16 %v874_v25, %v359_v26 }
 0x294   :  { %v881_v28 = vpop.f32.mrb[4].mxu1  ;;  %930 = vmatprep.subr.bf16.mxu0 %v929_v27 }
 0x295   :  { %v437_v29 = vpop.f32.mrb[5].mxu1  ;;  %932 = vmatpush3.bf16.msra.mxu0 %v929_v27 }
 0x296   :  { %v933_v30 = vpack.c.bf16 %v881_v28, %v437_v29 }
 0x298   :  { %934 = vmatprep.subr.bf16.mxu0 %v933_v30 }
 0x299   :  { %936 = vmatpush3.bf16.msra.mxu0 %v933_v30 }
 0x29c   :  { %891 = vmatmul.mubr.msk.f32.vlgmr.msra.gmra.mrb[4].mxu0 %vm200_vm1, %v30_v11 }
 0x29d   :  { %907 = vmatprep.mubr.msk.f32.mxu0 %vm286_vm2, %v629_v32 }
 0x36f   :  { %v892_v34 = vpop.f32.mrb[4].mxu0 }
 0x370   :  { %v525_v35 = vadd.f32 %v892_v34, %v798_v33  ;;  %v519_v36 = vpop.f32.mrb[5].mxu0 }
 0x371   :  { %v520_v37 = vadd.f32 %v798_v33, %v519_v36 }
 0x373   :  { %v937_v38 = vpack.c.bf16 %v525_v35, %v520_v37 }
 0x375   :  { %938 = vmatprep.subr.bf16.mxu1 %v937_v38  ;;  %942 = vmatprep.subr.bf16.mxu0 %v937_v38 }
 0x376   :  { %940 = vmatpush3.bf16.msra.mxu1 %v937_v38  ;;  %944 = vmatpush3.bf16.msra.mxu0 %v937_v38 }
 0x377   :  { %945 = vmatprep.subr.bf16.mxu1 %v937_v38 }
 0x379   :  { %898 = vmatmul.mubr.msk.f32.vlgmr.msra.gmra.mrb[6].mxu1 %vm286_vm2, %v529_v39  ;;  %908 = vmatmul.mubr.msk.f32.vlgmr.msra.gmra.mrb[6].mxu0 %vm286_vm2, %v630_v40 }
 0x37a   :  { %946 = vmatpush3.bf16.msra.mxu1 %v937_v38  ;;  %900 = vmatprep.mubr.msk.f32.mxu1 %vm286_vm2, %v530_v41 }
 0x37d   :  { %901 = vmatmul.mubr.msk.f32.gmra.mrb[8].mxu1 %vm286_vm2, %v531_v42 }
 0x37e   :  { %910 = vmatprep.mubr.msk.f32.mxu1 %vm286_vm2, %v631_v43 }
 0x381   :  { %911 = vmatmul.mubr.msk.f32.vlgmr.msra.gmra.mrb[10].mxu1 %vm286_vm2, %v632_v44 }
 0x44c   :  { %v899_v45 = vpop.f32.mrb[6].mxu1  ;;  %v909_v46 = vpop.f32.mrb[6].mxu0 }
 0x44d   :  { %v731_v47 = vmul.f32 %v909_v46, %v899_v45  ;;  %v610_v48 = vpop.f32.mrb[7].mxu1  ;;  %v711_v49 = vpop.f32.mrb[7].mxu0 }
 0x44e   :  { %v730_v50 = vmul.f32 %v711_v49, %v610_v48 }
 0x44f   :  { %v737_v55 = vsel %vm34_vm0, %v731_v47, 0.0 }
 0x450   :  { %v902_v51 = vpop.f32.mrb[8].mxu1  ;;  %v734_v52 = vsel %vm34_vm0, %v730_v50, 0.0 }
 0x451   :  { %735 = vadd.xlane.f32.xlu0 %v734_v52  ;;  %v620_v53 = vpop.f32.mrb[9].mxu1 }
 0x454   :  { %v912_v54 = vpop.f32.mrb[10].mxu1 }
 0x455   :  { %v733_v56 = vmul.f32 %v912_v54, %v902_v51  ;;  %738 = vadd.xlane.f32.xlu0 %v737_v55  ;;  %v721_v57 = vpop.f32.mrb[11].mxu1 }
 0x456   :  { %v732_v58 = vmul.f32 %v721_v57, %v620_v53 }
 0x457   :  { %v743_v60 = vsel %vm34_vm0, %v733_v56, 0.0 }
 0x458   :  { %v740_v59 = vsel %vm34_vm0, %v732_v58, 0.0 }
 0x459   :  { %741 = vadd.xlane.f32.xlu1 %v740_v59 }
 0x45d   :  { %744 = vadd.xlane.f32.xlu1 %v743_v60 }
 0x4de   :  { %v736_v63 = vpop.xlane.xlu0 %735 }
 0x4df   :  { %v755_v12 = vrot.slane %v736_v63, %v754_v7 }
 0x4e2   :  { %v739_v5 = vpop.xlane.xlu0 %738 }
 0x4e3   :  { %v760_v9 = vrot.slane %v739_v5, %v759_v3 }
 0x4e5   :  { %v762_v14 = vsel %vm761_vm3, %v760_v9, %v755_v12 }
 0x4e6   :  { %v742_v8 = vpop.xlane.xlu1 %741 }
 0x4e7   :  { %v767_v11 = vrot.slane %v742_v8, %v766_v6 }
 0x4e9   :  { %v769_v16 = vsel %vm768_vm4, %v767_v11, %v762_v14 }
 0x4ea   :  { %v745_v13 = vpop.xlane.xlu1 %744 }
 0x4eb   :  { %v774_v15 = vrot.slane %v745_v13, %v773_v10 }
 0x4ed   :  { %v776_v17 = vsel %vm775_vm5, %v774_v15, %v769_v16 }
 0x4ee   :  { %779 = vst.msk [vmem:[%s1087_s8] sm:$0x1] %vm778_vm6, %v776_v17 }

</bundles_post_ra>
